<compile_context>
chip_gen: v5e
topology: v5e:2x2
jax: 0.10.0
libtpu: 0.0.40
codegen_flags: <defaults>
</compile_context>

<pallas_src>
import jax
import jax.numpy as jnp
from jax.experimental import pallas as pl
from jax.experimental.pallas import tpu as pltpu


# ---------------------------------------------------------------------------
# Kernel (shared by the single-step and tiled paths)
# ---------------------------------------------------------------------------

def _masked_softmax_kernel(scores_ref, mask_ref, attn_ref):
    # scores_ref: [b, h, q, Lk]  (input dtype, upcast here)
    # mask_ref:   [b, q, Lk] int8, nonzero = masked; broadcast over heads
    s = scores_ref[...].astype(jnp.float32)
    masked = mask_ref[...][:, None, :, :] != 0          # integer compare, no f32 temp
    s = jnp.where(masked, jnp.float32(-1e9), s)

    # Numerically stable softmax over the last axis.
    mx = jnp.max(s, axis=-1, keepdims=True)
    e = jnp.exp(s - mx)
    denom = jnp.sum(e, axis=-1, keepdims=True)
    inv = 1.0 / denom                                    # exact, one per row
    attn_ref[...] = (e * inv).astype(attn_ref.dtype)


# ---------------------------------------------------------------------------
# Wrapper
# ---------------------------------------------------------------------------

_SINGLE_STEP_BYTES = 256 * 1024   # below this, one grid step (overhead-bound)


def _vmem_budget_bytes():
    """Scoped-VMEM limit safe for the current chip generation."""
    try:
        cap = int(pltpu.get_tpu_info().vmem_capacity_bytes)
    except Exception:
        cap = 64 * 1024 * 1024            # conservative: v7x per-TC VMEM
    # leave headroom for compiler internals; never exceed 96 MiB even on
    # 128 MiB parts (v5e/v6e), and 48 MiB on v7x (64 MiB physical)
    return min((cap * 3) // 4, 96 * 1024 * 1024)


def _pick_tq(Lq, Lk, elem_bytes, tile_data_budget):
    """Largest multiple-of-8 divisor of Lq whose live tile data fits budget."""
    # per row of tq: scores in (x2 double-buffer) + attn out (x2) + mask int8 (x2)
    per_row = Lk * (4 * elem_bytes + 2)
    cap_rows = min(max(tile_data_budget // per_row, 8), 1024)
    best = None
    t = 8
    while t <= min(Lq, cap_rows):
        if Lq % t == 0:
            best = t
        t += 8
    return best if best is not None else Lq   # full-dim block is always legal


def masked_softmax(scores, attn_mask, *, donate_scores=False):
    """attn = softmax(masked_fill(scores, mask broadcast over heads, -1e9), -1).

    scores:    [B, H, Lq, Lk]  (f32 or bf16 -- dtype preserved)
    attn_mask: [B, Lq, Lk]     bool / int (nonzero = masked position)
    """
    B, H, Lq, Lk = scores.shape
    out_dtype = scores.dtype                 # keep caller's dtype (bf16 stays bf16)
    mask_i8 = attn_mask.astype(jnp.int8)     # small, unreplicated DMA
    elem = jnp.dtype(scores.dtype).itemsize
    scores_bytes = B * H * Lq * Lk * elem

    if scores_bytes <= _SINGLE_STEP_BYTES:
        # Tiny working set: one grid step, full blocks; extra steps would be
        # pure per-step overhead.
        grid = (1,)
        s_spec = pl.BlockSpec((B, H, Lq, Lk), lambda i: (0, 0, 0, 0))
        m_spec = pl.BlockSpec((B, Lq, Lk), lambda i: (0, 0, 0))
        o_spec = pl.BlockSpec((B, H, Lq, Lk), lambda i: (0, 0, 0, 0))
        cparams = pltpu.CompilerParams(dimension_semantics=("arbitrary",))
    else:
        # Tiled, pipelined path: tile Lq, keep Lk (softmax axis) whole.
        budget = _vmem_budget_bytes()
        tq = _pick_tq(Lq, Lk, elem, budget // 2)
        nq = Lq // tq
        # H innermost + head-independent mask index_map -> mask block index is
        # unchanged across consecutive head steps, so its DMA is skipped.
        grid = (B, nq, H)
        s_spec = pl.BlockSpec((1, 1, tq, Lk), lambda b, q, h: (b, h, q, 0))
        m_spec = pl.BlockSpec((1, tq, Lk), lambda b, q, h: (b, q, 0))
        o_spec = pl.BlockSpec((1, 1, tq, Lk), lambda b, q, h: (b, h, q, 0))
        cparams = pltpu.CompilerParams(
            dimension_semantics=("parallel", "parallel", "arbitrary"),
            vmem_limit_bytes=budget)

    kwargs = {}
    if donate_scores:
        # Matches masked_fill_'s in-place footprint when the caller donates
        # the scores buffer (otherwise XLA would add a defensive copy).
        kwargs["input_output_aliases"] = {0: 0}

    return pl.pallas_call(
        _masked_softmax_kernel,
        out_shape=jax.ShapeDtypeStruct((B, H, Lq, Lk), out_dtype),
        grid=grid,
        in_specs=[s_spec, m_spec],
        out_specs=o_spec,
        compiler_params=cparams,
        **kwargs,
    )(scores, mask_i8)


# ---------------------------------------------------------------------------
# Main
# ---------------------------------------------------------------------------

def _reference(scores, attn_mask):
    return jax.nn.softmax(
        jnp.where(attn_mask[:, None, :, :], jnp.float32(-1e9),
                  scores.astype(jnp.float32)),
        axis=-1).astype(scores.dtype)


if __name__ == "__main__":
    fwd = jax.jit(masked_softmax)

    # --- Test 1: spec-sized shapes (single-step path) ---
    B, H, Lq, Lk = 2, 8, 8, 8
    key = jax.random.PRNGKey(0)
    ks, km, ks2, km2 = jax.random.split(key, 4)
    scores = jax.random.normal(ks, (B, H, Lq, Lk), jnp.float32)
    attn_mask = jax.random.bernoulli(km, 0.25, (B, Lq, Lk))   # True = pad

    attn = fwd(scores, attn_mask)
    jax.block_until_ready(attn)

    ref = _reference(scores, attn_mask)
    max_err = float(jnp.max(jnp.abs(attn - ref)))
    row_sum_err = float(jnp.max(jnp.abs(jnp.sum(attn, axis=-1) - 1.0)))
    assert attn.shape == (B, H, Lq, Lk)
    assert bool(jnp.all(jnp.isfinite(attn)))
    assert max_err < 1e-5, f"max abs error vs reference: {max_err}"
    assert row_sum_err < 1e-5, f"softmax rows do not sum to 1: {row_sum_err}"

    # --- Test 2: larger shapes exercising the tiled / pipelined path ---
    B2, H2, Lq2, Lk2 = 2, 8, 256, 256
    scores2 = jax.random.normal(ks2, (B2, H2, Lq2, Lk2), jnp.float32)
    attn_mask2 = jax.random.bernoulli(km2, 0.25, (B2, Lq2, Lk2))

    attn2 = fwd(scores2, attn_mask2)
    jax.block_until_ready(attn2)

    ref2 = _reference(scores2, attn_mask2)
    max_err2 = float(jnp.max(jnp.abs(attn2 - ref2)))
    assert attn2.shape == (B2, H2, Lq2, Lk2)
    assert bool(jnp.all(jnp.isfinite(attn2)))
    assert max_err2 < 1e-5, f"tiled path: max abs error vs reference: {max_err2}"

    print("KERNEL_OK")
</pallas_src>

<mosaic_0001>
module attributes {stable_mosaic.version = 11 : i64} {
  func.func @_masked_softmax_kernel(%arg0: i32, %arg1: memref<2x8x8x8xf32, #tpu.memory_space<vmem>>, %arg2: memref<2x8x8xi8, #tpu.memory_space<vmem>>, %arg3: memref<2x8x8x8xf32, #tpu.memory_space<vmem>>) attributes {dimension_semantics = [#tpu.dimension_semantics<arbitrary>], iteration_bounds = array<i64: 1>, scalar_prefetch = 0 : i64, scratch_operands = 0 : i64, tpu.core_type = #tpu.core_type<tc>, window_params = [{pipeline_mode = #tpu.pipeline_mode<synchronous>, transform_indices = @transform_0, window_bounds = array<i64: 2, 8, 8, 8>}, {pipeline_mode = #tpu.pipeline_mode<synchronous>, transform_indices = @transform_1, window_bounds = array<i64: 2, 8, 8>}, {pipeline_mode = #tpu.pipeline_mode<synchronous>, transform_indices = @transform_2, window_bounds = array<i64: 2, 8, 8, 8>}]} {
    %c0 = arith.constant 0 : index
    %c0_0 = arith.constant 0 : index
    %c0_1 = arith.constant 0 : index
    %c0_2 = arith.constant 0 : index
    %0 = vector.load %arg1[%c0, %c0_0, %c0_1, %c0_2] : memref<2x8x8x8xf32, #tpu.memory_space<vmem>>, vector<2x8x8x8xf32>
    %c0_3 = arith.constant 0 : index
    %c0_4 = arith.constant 0 : index
    %c0_5 = arith.constant 0 : index
    %1 = vector.load %arg2[%c0_3, %c0_4, %c0_5] : memref<2x8x8xi8, #tpu.memory_space<vmem>>, vector<2x8x8xi8>
    %2 = vector.shape_cast %1 : vector<2x8x8xi8> to vector<2x1x8x8xi8>
    %c0_i8 = arith.constant 0 : i8
    %3 = vector.broadcast %c0_i8 : i8 to vector<2x1x8x8xi8>
    %4 = arith.cmpi ne, %2, %3 : vector<2x1x8x8xi8>
    %cst = arith.constant -1.000000e+09 : f32
    %5 = vector.shape_cast %4 : vector<2x1x8x8xi1> to vector<2x1x8x8xi1>
    %6 = vector.broadcast %5 : vector<2x1x8x8xi1> to vector<2x8x8x8xi1>
    %7 = vector.broadcast %cst : f32 to vector<2x8x8x8xf32>
    %8 = arith.select %6, %7, %0 : vector<2x8x8x8xi1>, vector<2x8x8x8xf32>
    %cst_6 = arith.constant dense<0xFF800000> : vector<2x8x8xf32>
    %9 = vector.multi_reduction <maximumf>, %8, %cst_6 [3] : vector<2x8x8x8xf32> to vector<2x8x8xf32>
    %10 = vector.shape_cast %9 : vector<2x8x8xf32> to vector<2x8x8x1xf32>
    %11 = vector.broadcast %10 : vector<2x8x8x1xf32> to vector<2x8x8x8xf32>
    %12 = arith.subf %8, %11 : vector<2x8x8x8xf32>
    %13 = math.exp %12 : vector<2x8x8x8xf32>
    %cst_7 = arith.constant dense<0.000000e+00> : vector<2x8x8xf32>
    %14 = vector.multi_reduction <add>, %13, %cst_7 [3] : vector<2x8x8x8xf32> to vector<2x8x8xf32>
    %15 = vector.shape_cast %14 : vector<2x8x8xf32> to vector<2x8x8x1xf32>
    %cst_8 = arith.constant 1.000000e+00 : f32
    %16 = vector.broadcast %cst_8 : f32 to vector<2x8x8x1xf32>
    %17 = arith.divf %16, %15 : vector<2x8x8x1xf32>
    %18 = vector.broadcast %17 : vector<2x8x8x1xf32> to vector<2x8x8x8xf32>
    %19 = arith.mulf %13, %18 : vector<2x8x8x8xf32>
    %c0_9 = arith.constant 0 : index
    %c0_10 = arith.constant 0 : index
    %c0_11 = arith.constant 0 : index
    %c0_12 = arith.constant 0 : index
    %20 = vector.load %arg3[%c0_9, %c0_10, %c0_11, %c0_12] : memref<2x8x8x8xf32, #tpu.memory_space<vmem>>, vector<2x8x8x8xf32>
    tpu.vector_store %arg3[%c0_9, %c0_10, %c0_11, %c0_12], %19 {strides = array<i32>} : memref<2x8x8x8xf32, #tpu.memory_space<vmem>>, vector<2x8x8x8xf32>,
    return
  }
  func.func @transform_0(%arg0: i32) -> (i32, i32, i32, i32) {
    %c0_i32 = arith.constant 0 : i32
    %c0_i32_0 = arith.constant 0 : i32
    %c0_i32_1 = arith.constant 0 : i32
    %c0_i32_2 = arith.constant 0 : i32
    %c0_i32_3 = arith.constant 0 : i32
    return %c0_i32, %c0_i32_0, %c0_i32_1, %c0_i32_2 : i32, i32, i32, i32
  }
  func.func @transform_1(%arg0: i32) -> (i32, i32, i32) {
    %c0_i32 = arith.constant 0 : i32
    %c0_i32_0 = arith.constant 0 : i32
    %c0_i32_1 = arith.constant 0 : i32
    %c0_i32_2 = arith.constant 0 : i32
    return %c0_i32, %c0_i32_0, %c0_i32_1 : i32, i32, i32
  }
  func.func @transform_2(%arg0: i32) -> (i32, i32, i32, i32) {
    %c0_i32 = arith.constant 0 : i32
    %c0_i32_0 = arith.constant 0 : i32
    %c0_i32_1 = arith.constant 0 : i32
    %c0_i32_2 = arith.constant 0 : i32
    %c0_i32_3 = arith.constant 0 : i32
    return %c0_i32, %c0_i32_0, %c0_i32_1, %c0_i32_2 : i32, i32, i32, i32
  }
}

</mosaic_0001>

<bundles_post_ra>
// kernel: masked_softmax.1
= control target key start
LH: loop header
LB: loop body
LE: loop exit
PB: predicated region body
PF: predicated region fallthrough
CT: control target
= control target key end

     0   :  { %7 = vsyncpa [#allocation3], 0  ;;  %s1060_s0 = inlined_call_operand.hbm [shape: f32[2,8,8,8], index: 0, kind: input, shape index: {}]   ;;  %s1061_s1 = inlined_call_operand.vmem [shape: s8[2,8,8], index: 1, kind: input, shape index: {}]   ;;  %s1062_s2 = inlined_call_operand.hbm [shape: f32[2,8,8,8], index: 2, kind: output, shape index: {}]  }
   0x1   :  { %8 = vsyncpa [#allocation4], 0  ;;  %s13_s11 = sshll.u32 %s1060_s0, 4  ;;  %s633_s12 = smov [#allocation2]   ;;  %s14_s11 = int_to_ptr.hbm [resolvable:$true] %s13_s11 }
   0x2   :  { %s15_s13 = sshll.u32 %s633_s12, 4  ;;  %s634_s14 = smov 128   ;;  %s16_s13 = int_to_ptr.vmem [resolvable:$true] %s15_s13 }
   0x3   :  { %s635_s15 = smov 8  }
   0x4   :  { %21 = dma.hbm_to_vmem [thread:$0]  %s14_s11, 2048, %s16_s13, [#allocation3], %s634_s14, %s634_s14, %s635_s15  }
   0x5   :  { %629 = dma.done.wait [#allocation3], 2048  }
   0x6   :  { %630 = vsyncadd [#allocation3], 4294965248  ;;  %v46_v0 = vld [vmem:[%s1061_s1] sm:$0x3]  ;;  %v636_v1 = vmov 0   ;;  %v32_v6 = vld [vmem:[#allocation2 + $0x10] sm:$0xff] }
   0x7   :  { %vm48_vm0 = vnez %v46_v0  ;;  %v47_v3 = vld [vmem:[%s1061_s1 + $0x2] sm:$0x3]  ;;  %vm76_vm1 = vcmask 64512   ;;  %v35_v15 = vld [vmem:[#allocation2 + $0x28] sm:$0xff]  ;;  %v33_v16 = vld [vmem:[#allocation2 + $0x18] sm:$0xff]  ;;  %s637_s1 = smov [#allocation5]  }
   0x8   :  { %v50_v2 = vsel %vm48_vm0, 16843009, %v636_v1  ;;  %v34_v4 = vld [vmem:[#allocation2 + $0x20] sm:$0xff]  ;;  %vm49_vm3 = vnez %v47_v3  ;;  %v31_v17 = vld [vmem:[#allocation2 + $0x8] sm:$0xff]  ;;  %v37_v28 = vld [vmem:[#allocation2 + $0x38] sm:$0xff]  ;;  %s497_s19 = sshll.u32 %s637_s1, 4  ;;  %s498_s19 = int_to_ptr.vmem [resolvable:$true] %s497_s19 }
   0x9   :  { %v52_v5 = vunpack.c.0.s8 %v50_v2  ;;  %v30_v7 = vld [vmem:[#allocation2] sm:$0xff]  ;;  %v51_v18 = vsel %vm49_vm3, 16843009, %v636_v1  ;;  %v36_v29 = vld [vmem:[#allocation2 + $0x30] sm:$0xff]  ;;  %v41_v36 = vld [vmem:[#allocation2 + $0x58] sm:$0xff]  ;;  %s499_s22 = sshll.u32 %s1062_s2, 4  ;;  %s500_s22 = int_to_ptr.hbm [resolvable:$true] %s499_s22 }
   0xa   :  { %v53_v22 = vunpack.c.0.s8 %v51_v18  ;;  %v38_v26 = vld [vmem:[#allocation2 + $0x40] sm:$0xff]  ;;  %v40_v37 = vld [vmem:[#allocation2 + $0x50] sm:$0xff]  ;;  %v39_v38 = vld [vmem:[#allocation2 + $0x48] sm:$0xff] }
   0xb   :  { %vm665_vm2 = vcmp.ne.s32.totalorder %v52_v5, 0  ;;  %v44_v45 = vld [vmem:[#allocation2 + $0x70] sm:$0xff]  ;;  %v43_v46 = vld [vmem:[#allocation2 + $0x68] sm:$0xff]  ;;  %v42_v47 = vld [vmem:[#allocation2 + $0x60] sm:$0xff] }
   0xc   :  { %v671_v9 = vsel %vm665_vm2, -1e+09, %v34_v4  ;;  %v675_v10 = vsel %vm665_vm2, -1e+09, %v32_v6  ;;  %v679_v11 = vsel %vm665_vm2, -1e+09, %v30_v7 }
   0xd   :  { %v89_v12 = vsel %vm76_vm1, %v671_v9, -inf  ;;  %v83_v13 = vsel %vm76_vm1, %v675_v10, -inf  ;;  %v77_v14 = vsel %vm76_vm1, %v679_v11, -inf  ;;  %v689_v19 = vsel %vm665_vm2, -1e+09, %v35_v15  ;;  %v45_v54 = vld [vmem:[#allocation2 + $0x78] sm:$0xff] }
   0xe   :  { %90 = vmax.xlane.f32.xlu2 %v89_v12  ;;  %84 = vmax.xlane.f32.xlu1 %v83_v13  ;;  %v693_v20 = vsel %vm665_vm2, -1e+09, %v33_v16  ;;  %v697_v21 = vsel %vm665_vm2, -1e+09, %v31_v17  ;;  %v92_v23 = vsel %vm76_vm1, %v689_v19, -inf  ;;  %vm705_vm4 = vcmp.ne.s32.totalorder %v53_v22, 0 }
   0xf   :  { %78 = vmax.xlane.f32.xlu0 %v77_v14  ;;  %v86_v24 = vsel %vm76_vm1, %v693_v20, -inf  ;;  %v80_v25 = vsel %vm76_vm1, %v697_v21, -inf  ;;  %v711_v30 = vsel %vm705_vm4, -1e+09, %v38_v26  ;;  %v715_v31 = vsel %vm665_vm2, -1e+09, %v37_v28 }
  0x10   :  { %v719_v32 = vsel %vm665_vm2, -1e+09, %v36_v29  ;;  %v101_v33 = vsel %vm76_vm1, %v711_v30, -inf  ;;  %v98_v34 = vsel %vm76_vm1, %v715_v31, -inf  ;;  %v729_v39 = vsel %vm705_vm4, -1e+09, %v41_v36 }
  0x11   :  { %v95_v35 = vsel %vm76_vm1, %v719_v32, -inf  ;;  %v733_v40 = vsel %vm705_vm4, -1e+09, %v40_v37  ;;  %v737_v41 = vsel %vm705_vm4, -1e+09, %v39_v38  ;;  %v110_v42 = vsel %vm76_vm1, %v729_v39, -inf }
  0x12   :  { %v107_v43 = vsel %vm76_vm1, %v733_v40, -inf  ;;  %v104_v44 = vsel %vm76_vm1, %v737_v41, -inf  ;;  %v747_v48 = vsel %vm705_vm4, -1e+09, %v44_v45  ;;  %v751_v49 = vsel %vm705_vm4, -1e+09, %v43_v46 }
  0x13   :  { %v755_v50 = vsel %vm705_vm4, -1e+09, %v42_v47  ;;  %v119_v51 = vsel %vm76_vm1, %v747_v48, -inf  ;;  %v116_v52 = vsel %vm76_vm1, %v751_v49, -inf  ;;  %v765_v55 = vsel %vm705_vm4, -1e+09, %v45_v54 }
  0x14   :  { %v113_v53 = vsel %vm76_vm1, %v755_v50, -inf  ;;  %v122_v56 = vsel %vm76_vm1, %v765_v55, -inf }
  0x16   :  { %93 = vmax.xlane.f32.xlu2 %v92_v23  ;;  %87 = vmax.xlane.f32.xlu1 %v86_v24 }
  0x17   :  { %81 = vmax.xlane.f32.xlu0 %v80_v25 }
  0x1e   :  { %102 = vmax.xlane.f32.xlu2 %v101_v33  ;;  %99 = vmax.xlane.f32.xlu1 %v98_v34 }
  0x1f   :  { %96 = vmax.xlane.f32.xlu0 %v95_v35 }
  0x26   :  { %111 = vmax.xlane.f32.xlu2 %v110_v42  ;;  %108 = vmax.xlane.f32.xlu1 %v107_v43 }
  0x27   :  { %105 = vmax.xlane.f32.xlu0 %v104_v44 }
  0x2e   :  { %120 = vmax.xlane.f32.xlu2 %v119_v51  ;;  %117 = vmax.xlane.f32.xlu1 %v116_v52 }
  0x2f   :  { %114 = vmax.xlane.f32.xlu0 %v113_v53 }
  0x37   :  { %123 = vmax.xlane.f32.xlu0 %v122_v56 }
  0x81   :  { %v91_v57 = vpop.xlane.xlu2 %90  ;;  %v85_v58 = vpop.xlane.xlu1 %84 }
  0x82   :  { %v127_v59 = vsub.f32 %v675_v10, %v85_v58  ;;  %v79_v60 = vpop.xlane.xlu0 %78  ;;  %v129_v10 = vsub.f32 %v671_v9, %v91_v57 }
  0x83   :  { %v125_v61 = vsub.f32 %v679_v11, %v79_v60 }
  0x84   :  { %v145_v62 = vmul.f32 1.442695, %v127_v59  ;;  %v149_v15 = vmul.f32 1.442695, %v129_v10 }
  0x85   :  { %v141_v63 = vmul.f32 1.442695, %v125_v61 }
  0x86   :  { %517 = vpow2.f32 %v145_v62 }
  0x87   :  { %519 = vpow2.f32 %v141_v63 }
  0x89   :  { %v94_v0 = vpop.xlane.xlu2 %93  ;;  %v88_v1 = vpop.xlane.xlu1 %87 }
  0x8a   :  { %v130_v2 = vsub.f32 %v689_v19, %v94_v0  ;;  %v128_v3 = vsub.f32 %v693_v20, %v88_v1  ;;  %v82_v4 = vpop.xlane.xlu0 %81 }
  0x8b   :  { %v126_v5 = vsub.f32 %v697_v21, %v82_v4 }
  0x8c   :  { %v151_v6 = vmul.f32 1.442695, %v130_v2  ;;  %v147_v7 = vmul.f32 1.442695, %v128_v3  ;;  %v774_v8 = vpop.eup %517 }
  0x8d   :  { %v143_v11 = vmul.f32 1.442695, %v126_v5  ;;  %v777_v12 = vpop.eup %519  ;;  %v179_v13 = vsel %vm76_vm1, %v774_v8, 0.0 }
  0x8e   :  { %521 = vpow2.f32 %v151_v6  ;;  %180 = vadd.xlane.f32.xlu0 %v179_v13  ;;  %v173_v14 = vsel %vm76_vm1, %v777_v12, 0.0 }
  0x8f   :  { %523 = vpow2.f32 %v147_v7  ;;  %174 = vadd.xlane.f32.xlu1 %v173_v14 }
  0x90   :  { %525 = vpow2.f32 %v143_v11 }
  0x91   :  { %v103_v16 = vpop.xlane.xlu2 %102  ;;  %v100_v17 = vpop.xlane.xlu1 %99  ;;  %527 = vpow2.f32 %v149_v15 }
  0x92   :  { %v133_v18 = vsub.f32 %v711_v30, %v103_v16  ;;  %v97_v9 = vpop.xlane.xlu0 %96  ;;  %v132_v22 = vsub.f32 %v715_v31, %v100_v17 }
  0x93   :  { %v131_v19 = vsub.f32 %v719_v32, %v97_v9 }
  0x94   :  { %v785_v20 = vpop.eup %521  ;;  %v157_v21 = vmul.f32 1.442695, %v133_v18  ;;  %v155_v29 = vmul.f32 1.442695, %v132_v22 }
  0x95   :  { %v788_v23 = vpop.eup %523  ;;  %v153_v24 = vmul.f32 1.442695, %v131_v19  ;;  %v188_v25 = vsel %vm76_vm1, %v785_v20, 0.0 }
  0x96   :  { %v792_v26 = vpop.eup %525  ;;  %529 = vpow2.f32 %v157_v21  ;;  %v182_v27 = vsel %vm76_vm1, %v788_v23, 0.0  ;;  %189 = vadd.xlane.f32.xlu0 %v188_v25 }
  0x97   :  { %531 = vpow2.f32 %v153_v24  ;;  %v176_v28 = vsel %vm76_vm1, %v792_v26, 0.0  ;;  %183 = vadd.xlane.f32.xlu1 %v182_v27  ;;  %v799_v34 = vpop.eup %527 }
  0x98   :  { %177 = vadd.xlane.f32.xlu2 %v176_v28  ;;  %533 = vpow2.f32 %v155_v29 }
  0x99   :  { %v112_v30 = vpop.xlane.xlu2 %111  ;;  %v109_v31 = vpop.xlane.xlu1 %108 }
  0x9a   :  { %v136_v32 = vsub.f32 %v729_v39, %v112_v30  ;;  %v106_v33 = vpop.xlane.xlu0 %105  ;;  %v135_v38 = vsub.f32 %v733_v40, %v109_v31 }
  0x9b   :  { %v134_v35 = vsub.f32 %v737_v41, %v106_v33  ;;  %v185_v41 = vsel %vm76_vm1, %v799_v34, 0.0 }
  0x9c   :  { %v802_v36 = vpop.eup %529  ;;  %v163_v37 = vmul.f32 1.442695, %v136_v32  ;;  %v161_v45 = vmul.f32 1.442695, %v135_v38 }
  0x9d   :  { %v805_v42 = vpop.eup %531  ;;  %v159_v43 = vmul.f32 1.442695, %v134_v35  ;;  %v197_v44 = vsel %vm76_vm1, %v802_v36, 0.0 }
  0x9e   :  { %535 = vpow2.f32 %v163_v37  ;;  %v191_v39 = vsel %vm76_vm1, %v805_v42, 0.0  ;;  %198 = vadd.xlane.f32.xlu0 %v197_v44  ;;  %v813_v47 = vpop.eup %533 }
  0x9f   :  { %537 = vpow2.f32 %v159_v43  ;;  %192 = vadd.xlane.f32.xlu1 %v191_v39  ;;  %v194_v61 = vsel %vm76_vm1, %v813_v47, 0.0 }
  0xa0   :  { %186 = vadd.xlane.f32.xlu2 %v185_v41  ;;  %539 = vpow2.f32 %v161_v45 }
  0xa1   :  { %v121_v46 = vpop.xlane.xlu2 %120  ;;  %v118_v40 = vpop.xlane.xlu1 %117 }
  0xa2   :  { %v139_v51 = vsub.f32 %v747_v48, %v121_v46  ;;  %v115_v52 = vpop.xlane.xlu0 %114  ;;  %v138_v57 = vsub.f32 %v751_v49, %v118_v40 }
  0xa3   :  { %v137_v53 = vsub.f32 %v755_v50, %v115_v52 }
  0xa4   :  { %v817_v54 = vpop.eup %535  ;;  %v169_v56 = vmul.f32 1.442695, %v139_v51  ;;  %v167_v50 = vmul.f32 1.442695, %v138_v57 }
  0xa5   :  { %v820_v58 = vpop.eup %537  ;;  %v165_v59 = vmul.f32 1.442695, %v137_v53  ;;  %v206_v60 = vsel %vm76_vm1, %v817_v54, 0.0 }
  0xa6   :  { %541 = vpow2.f32 %v169_v56  ;;  %v200_v48 = vsel %vm76_vm1, %v820_v58, 0.0  ;;  %207 = vadd.xlane.f32.xlu0 %v206_v60  ;;  %v828_v62 = vpop.eup %539 }
  0xa7   :  { %543 = vpow2.f32 %v165_v59  ;;  %201 = vadd.xlane.f32.xlu1 %v200_v48  ;;  %v203_v4 = vsel %vm76_vm1, %v828_v62, 0.0 }
  0xa8   :  { %195 = vadd.xlane.f32.xlu2 %v194_v61  ;;  %545 = vpow2.f32 %v167_v50 }
  0xaa   :  { %v124_v49 = vpop.xlane.xlu0 %123 }
  0xab   :  { %v140_v63 = vsub.f32 %v765_v55, %v124_v49 }
  0xac   :  { %v831_v0 = vpop.eup %541 }
  0xad   :  { %v833_v1 = vpop.eup %543  ;;  %v171_v2 = vmul.f32 1.442695, %v140_v63  ;;  %v215_v3 = vsel %vm76_vm1, %v831_v0, 0.0 }
  0xae   :  { %v209_v5 = vsel %vm76_vm1, %v833_v1, 0.0  ;;  %216 = vadd.xlane.f32.xlu0 %v215_v3  ;;  %v841_v55 = vpop.eup %545 }
  0xaf   :  { %547 = vpow2.f32 %v171_v2  ;;  %210 = vadd.xlane.f32.xlu1 %v209_v5  ;;  %v212_v7 = vsel %vm76_vm1, %v841_v55, 0.0 }
  0xb0   :  { %204 = vadd.xlane.f32.xlu2 %v203_v4 }
  0xb5   :  { %v843_v6 = vpop.eup %547 }
  0xb6   :  { %v218_v10 = vsel %vm76_vm1, %v843_v6, 0.0 }
  0xb7   :  { %219 = vadd.xlane.f32.xlu1 %v218_v10 }
  0xb8   :  { %213 = vadd.xlane.f32.xlu2 %v212_v7 }
 0x101   :  { %v181_v11 = vpop.xlane.xlu0 %180 }
 0x102   :  { %v175_v13 = vpop.xlane.xlu1 %174  ;;  %549 = vrcp.f32 %v181_v11  ;;  %v260_v9 = vand.u32 2147483647, %v181_v11  ;;  %v262_v25 = vand.u32 2147483648, %v181_v11  ;;  %vm256_vm8 = vweird.f32 %v181_v11 }
 0x103   :  { %551 = vrcp.f32 %v175_v13  ;;  %v230_v22 = vand.u32 2147483647, %v175_v13  ;;  %v232_v28 = vand.u32 2147483648, %v175_v13  ;;  %vm226_vm6 = vweird.f32 %v175_v13 }
 0x104   :  { %vm862_vm10 = vcmp.eq.f32.partialorder %v260_v9, 8.507059e+37  ;;  %v263_v35 = vor.u32 1.1754944e-38, %v262_v25 }
 0x105   :  { %vm858_vm9 = vcmp.eq.f32.partialorder %v230_v22, 8.507059e+37  ;;  %v233_v43 = vor.u32 1.1754944e-38, %v232_v28 }
 0x108   :  { %v550_v14 = vpop.eup %549 }
 0x109   :  { %v552_v15 = vpop.eup %551  ;;  %v252_v16 = vmul.f32 %v550_v14, %v181_v11  ;;  %v849_v17 = vpop.xlane.xlu0 %189  ;;  %vm257_vm5 = vweird.f32 %v550_v14 }
 0x10a   :  { %v222_v18 = vmul.f32 %v552_v15, %v175_v13  ;;  %v851_v19 = vpop.xlane.xlu1 %183  ;;  %553 = vrcp.f32 %v849_v17  ;;  %vm227_vm7 = vweird.f32 %v552_v15  ;;  %vm258_vm11 = vmor %vm256_vm8, %vm257_vm5  ;;  %vm301_vm13 = vweird.f32 %v849_v17 }
 0x10b   :  { %v853_v21 = vpop.xlane.xlu2 %177  ;;  %v253_v24 = vsub.f32 1.0, %v252_v16  ;;  %555 = vrcp.f32 %v851_v19  ;;  %vm271_vm12 = vweird.f32 %v851_v19  ;;  %vm228_vm14 = vmor %vm226_vm6, %vm227_vm7  ;;  %v275_v41 = vand.u32 2147483647, %v851_v19 }
 0x10c   :  { %v223_v27 = vsub.f32 1.0, %v222_v18  ;;  %557 = vrcp.f32 %v853_v21  ;;  %v277_v45 = vand.u32 2147483648, %v851_v19  ;;  %v245_v56 = vand.u32 2147483647, %v853_v21 }
 0x10d   :  { %v254_v29 = vmul.f32 %v550_v14, %v253_v24  ;;  %v247_v48 = vand.u32 2147483648, %v853_v21  ;;  %v305_v4 = vand.u32 2147483647, %v849_v17  ;;  %vm893_vm2 = vcmp.eq.f32.partialorder %v275_v41, 8.507059e+37 }
 0x10e   :  { %v224_v30 = vmul.f32 %v552_v15, %v223_v27  ;;  %vm241_vm3 = vweird.f32 %v853_v21  ;;  %vm908_vm7 = vcmp.eq.f32.partialorder %v245_v56, 8.507059e+37 }
 0x10f   :  { %v255_v32 = vadd.f32 %v550_v14, %v254_v29 }
 0x110   :  { %v554_v37 = vpop.eup %553  ;;  %v225_v38 = vadd.f32 %v552_v15, %v224_v30 }
 0x111   :  { %v556_v44 = vpop.eup %555  ;;  %v259_v39 = vsel %vm258_vm11, %v550_v14, %v255_v32  ;;  %v297_v46 = vmul.f32 %v554_v37, %v849_v17  ;;  %vm302_vm15 = vweird.f32 %v554_v37  ;;  %v889_v5 = vpop.xlane.xlu0 %198  ;;  %v278_v14 = vor.u32 1.1754944e-38, %v277_v45 }
 0x112   :  { %v558_v40 = vpop.eup %557  ;;  %v229_v51 = vsel %vm228_vm14, %v552_v15, %v225_v38  ;;  %v264_v52 = vsel %vm862_vm10, %v263_v35, %v259_v39  ;;  %v267_v53 = vmul.f32 %v556_v44, %v851_v19  ;;  %v882_v50 = vpop.xlane.xlu1 %192  ;;  %vm272_vm0 = vweird.f32 %v556_v44  ;;  %vm901_vm5 = vmor %vm301_vm13, %vm302_vm15 }
 0x113   :  { %v875_v57 = vpop.xlane.xlu2 %186  ;;  %v234_v59 = vsel %vm858_vm9, %v233_v43, %v229_v51  ;;  %v463_v60 = vmul.f32 %v774_v8, %v264_v52  ;;  %v237_v61 = vmul.f32 %v558_v40, %v853_v21  ;;  %v298_v2 = vsub.f32 1.0, %v297_v46  ;;  %vm273_vm6 = vmor %vm271_vm12, %vm272_vm0 }
 0x114   :  { %v461_v49 = vmul.f32 %v777_v12, %v234_v59  ;;  %v268_v63 = vsub.f32 1.0, %v267_v53  ;;  %559 = vrcp.f32 %v875_v57  ;;  %v307_v8 = vand.u32 2147483648, %v849_v17 }
 0x115   :  { %479 = vst.msk [vmem:[#allocation5 + $0x10] sm:$0xff] %vm76_vm1, %v463_v60  ;;  %v238_v3 = vsub.f32 1.0, %v237_v61  ;;  %v299_v10 = vmul.f32 %v554_v37, %v298_v2  ;;  %561 = vrcp.f32 %v882_v50  ;;  %vm242_vm4 = vweird.f32 %v558_v40 }
 0x116   :  { %477 = vst.msk [vmem:[#allocation5] sm:$0xff] %vm76_vm1, %v461_v49  ;;  %v269_v7 = vmul.f32 %v556_v44, %v268_v63  ;;  %563 = vrcp.f32 %v889_v5  ;;  %v248_v21 = vor.u32 1.1754944e-38, %v247_v48  ;;  %v308_v22 = vor.u32 1.1754944e-38, %v307_v8  ;;  %vm243_vm8 = vmor %vm241_vm3, %vm242_vm4 }
 0x117   :  { %v239_v11 = vmul.f32 %v558_v40, %v238_v3  ;;  %v300_v15 = vadd.f32 %v554_v37, %v299_v10  ;;  %vm306_vm9 = vcmp.eq.f32.partialorder %v305_v4, 8.507059e+37  ;;  %v290_v27 = vand.u32 2147483647, %v875_v57 }
 0x118   :  { %v270_v13 = vadd.f32 %v556_v44, %v269_v7  ;;  %vm286_vm10 = vweird.f32 %v875_v57  ;;  %vm316_vm12 = vweird.f32 %v882_v50  ;;  %v322_v52 = vand.u32 2147483648, %v882_v50 }
 0x119   :  { %v240_v18 = vadd.f32 %v558_v40, %v239_v11  ;;  %v304_v17 = vsel %vm901_vm5, %v554_v37, %v300_v15  ;;  %vm931_vm11 = vcmp.eq.f32.partialorder %v290_v27, 8.507059e+37  ;;  %v940_v51 = vpop.xlane.xlu0 %207  ;;  %v350_v53 = vand.u32 2147483647, %v889_v5 }
 0x11a   :  { %v560_v24 = vpop.eup %559  ;;  %v274_v25 = vsel %vm273_vm6, %v556_v44, %v270_v13  ;;  %v309_v29 = vsel %vm306_vm9, %v308_v22, %v304_v17  ;;  %v292_v44 = vand.u32 2147483648, %v875_v57  ;;  %v928_v41 = vpop.xlane.xlu1 %201  ;;  %v352_v56 = vand.u32 2147483648, %v889_v5 }
 0x11b   :  { %v279_v19 = vsel %vm893_vm2, %v278_v14, %v274_v25  ;;  %v244_v28 = vsel %vm243_vm8, %v558_v40, %v240_v18  ;;  %v282_v30 = vmul.f32 %v560_v24, %v875_v57  ;;  %v918_v31 = vpop.xlane.xlu2 %195  ;;  %v562_v32 = vpop.eup %561  ;;  %v466_v37 = vmul.f32 %v785_v20, %v309_v29 }
 0x11c   :  { %v464_v33 = vmul.f32 %v788_v23, %v279_v19  ;;  %v249_v35 = vsel %vm908_vm7, %v248_v21, %v244_v28  ;;  %v312_v39 = vmul.f32 %v562_v32, %v882_v50  ;;  %v564_v45 = vpop.eup %563  ;;  %v320_v20 = vand.u32 2147483647, %v882_v50 }
 0x11d   :  { %v462_v38 = vmul.f32 %v792_v26, %v249_v35  ;;  %v283_v43 = vsub.f32 1.0, %v282_v30  ;;  %565 = vrcp.f32 %v918_v31  ;;  %vm287_vm13 = vweird.f32 %v560_v24  ;;  %482 = vst.msk [vmem:[#allocation5 + $0x28] sm:$0xff] %vm76_vm1, %v466_v37 }
 0x11e   :  { %480 = vst.msk [vmem:[#allocation5 + $0x18] sm:$0xff] %vm76_vm1, %v464_v33  ;;  %v313_v46 = vsub.f32 1.0, %v312_v39  ;;  %v342_v40 = vmul.f32 %v564_v45, %v889_v5  ;;  %567 = vrcp.f32 %v928_v41  ;;  %vm317_vm14 = vweird.f32 %v562_v32  ;;  %vm288_vm15 = vmor %vm286_vm10, %vm287_vm13 }
 0x11f   :  { %478 = vst.msk [vmem:[#allocation5 + $0x8] sm:$0xff] %vm76_vm1, %v462_v38  ;;  %v284_v26 = vmul.f32 %v560_v24, %v283_v43  ;;  %v293_v48 = vor.u32 1.1754944e-38, %v292_v44  ;;  %vm949_vm0 = vcmp.eq.f32.partialorder %v320_v20, 8.507059e+37  ;;  %vm346_vm2 = vweird.f32 %v889_v5  ;;  %vm318_vm4 = vmor %vm316_vm12, %vm317_vm14 }
 0x120   :  { %v314_v60 = vmul.f32 %v562_v32, %v313_v46  ;;  %v343_v61 = vsub.f32 1.0, %v342_v40  ;;  %569 = vrcp.f32 %v940_v51  ;;  %vm347_vm3 = vweird.f32 %v564_v45 }
 0x121   :  { %v285_v59 = vadd.f32 %v560_v24, %v284_v26  ;;  %v323_v57 = vor.u32 1.1754944e-38, %v322_v52  ;;  %vm959_vm5 = vcmp.eq.f32.partialorder %v350_v53, 8.507059e+37  ;;  %v353_v10 = vor.u32 1.1754944e-38, %v352_v56  ;;  %vm348_vm6 = vmor %vm346_vm2, %vm347_vm3 }
 0x122   :  { %v315_v2 = vadd.f32 %v562_v32, %v314_v60  ;;  %v344_v3 = vmul.f32 %v564_v45, %v343_v61  ;;  %vm331_vm7 = vweird.f32 %v918_v31  ;;  %v335_v50 = vand.u32 2147483647, %v918_v31  ;;  %v981_v5 = vpop.xlane.xlu1 %210 }
 0x123   :  { %v289_v63 = vsel %vm288_vm15, %v560_v24, %v285_v59  ;;  %v566_v4 = vpop.eup %565  ;;  %v965_v15 = vpop.xlane.xlu2 %204  ;;  %v337_v9 = vand.u32 2147483648, %v918_v31  ;;  %vm361_vm9 = vweird.f32 %v928_v41  ;;  %v365_v30 = vand.u32 2147483647, %v928_v41 }
 0x124   :  { %v294_v8 = vsel %vm931_vm11, %v293_v48, %v289_v63  ;;  %v319_v11 = vsel %vm318_vm4, %v562_v32, %v315_v2  ;;  %v345_v13 = vadd.f32 %v564_v45, %v344_v3  ;;  %v327_v14 = vmul.f32 %v566_v4, %v918_v31  ;;  %v568_v16 = vpop.eup %567 }
 0x125   :  { %v465_v12 = vmul.f32 %v799_v34, %v294_v8  ;;  %v324_v18 = vsel %vm949_vm0, %v323_v57, %v319_v11  ;;  %v357_v24 = vmul.f32 %v568_v16, %v928_v41  ;;  %vm332_vm8 = vweird.f32 %v566_v4 }
 0x126   :  { %v467_v34 = vmul.f32 %v805_v42, %v324_v18  ;;  %v349_v21 = vsel %vm348_vm6, %v564_v45, %v345_v13  ;;  %v328_v22 = vsub.f32 1.0, %v327_v14  ;;  %v570_v25 = vpop.eup %569  ;;  %571 = vrcp.f32 %v965_v15  ;;  %vm333_vm12 = vmor %vm331_vm7, %vm332_vm8 }
 0x127   :  { %481 = vst.msk [vmem:[#allocation5 + $0x20] sm:$0xff] %vm76_vm1, %v465_v12  ;;  %v354_v17 = vsel %vm959_vm5, %v353_v10, %v349_v21  ;;  %v358_v19 = vsub.f32 1.0, %v357_v24  ;;  %v387_v28 = vmul.f32 %v570_v25, %v940_v51  ;;  %vm986_vm10 = vcmp.eq.f32.partialorder %v335_v50, 8.507059e+37 }
 0x128   :  { %483 = vst.msk [vmem:[#allocation5 + $0x30] sm:$0xff] %vm76_vm1, %v467_v34  ;;  %v469_v27 = vmul.f32 %v802_v36, %v354_v17  ;;  %v329_v42 = vmul.f32 %v566_v4, %v328_v22  ;;  %vm362_vm11 = vweird.f32 %v568_v16  ;;  %v367_v32 = vand.u32 2147483648, %v928_v41  ;;  %v994_v36 = vpop.xlane.xlu0 %216 }
 0x129   :  { %v359_v35 = vmul.f32 %v568_v16, %v358_v19  ;;  %v388_v37 = vsub.f32 1.0, %v387_v28  ;;  %573 = vrcp.f32 %v981_v5  ;;  %v338_v38 = vor.u32 1.1754944e-38, %v337_v9  ;;  %vm363_vm15 = vmor %vm361_vm9, %vm362_vm11 }
 0x12a   :  { %485 = vst.msk [vmem:[#allocation5 + $0x40] sm:$0xff] %vm76_vm1, %v469_v27  ;;  %v330_v33 = vadd.f32 %v566_v4, %v329_v42  ;;  %vm391_vm13 = vweird.f32 %v940_v51  ;;  %v395_v43 = vand.u32 2147483647, %v940_v51  ;;  %v397_v44 = vand.u32 2147483648, %v940_v51  ;;  %v1019_v51 = vpop.xlane.xlu1 %219 }
 0x12b   :  { %v360_v45 = vadd.f32 %v568_v16, %v359_v35  ;;  %v389_v23 = vmul.f32 %v570_v25, %v388_v37  ;;  %vm392_vm14 = vweird.f32 %v570_v25  ;;  %vm366_vm0 = vcmp.eq.f32.partialorder %v365_v30, 8.507059e+37  ;;  %v1012_v60 = vpop.xlane.xlu2 %213 }
 0x12c   :  { %v334_v39 = vsel %vm333_vm12, %v566_v4, %v330_v33  ;;  %v572_v20 = vpop.eup %571  ;;  %v368_v31 = vor.u32 1.1754944e-38, %v367_v32  ;;  %575 = vrcp.f32 %v994_v36  ;;  %vm393_vm2 = vmor %vm391_vm13, %vm392_vm14  ;;  %vm396_vm3 = vcmp.eq.f32.partialorder %v395_v43, 8.507059e+37 }
 0x12d   :  { %v339_v26 = vsel %vm986_vm10, %v338_v38, %v334_v39  ;;  %v364_v40 = vsel %vm363_vm15, %v568_v16, %v360_v45  ;;  %v390_v52 = vadd.f32 %v570_v25, %v389_v23  ;;  %v372_v53 = vmul.f32 %v572_v20, %v965_v15 }
 0x12e   :  { %v468_v46 = vmul.f32 %v813_v47, %v339_v26  ;;  %v369_v56 = vsel %vm366_vm0, %v368_v31, %v364_v40  ;;  %v398_v59 = vor.u32 1.1754944e-38, %v397_v44  ;;  %v380_v47 = vand.u32 2147483647, %v965_v15 }
 0x12f   :  { %v574_v41 = vpop.eup %573  ;;  %v470_v61 = vmul.f32 %v820_v58, %v369_v56  ;;  %v394_v48 = vsel %vm393_vm2, %v570_v25, %v390_v52  ;;  %v373_v49 = vsub.f32 1.0, %v372_v53  ;;  %v382_v2 = vand.u32 2147483648, %v965_v15 }
 0x130   :  { %484 = vst.msk [vmem:[#allocation5 + $0x38] sm:$0xff] %vm76_vm1, %v468_v46  ;;  %v399_v63 = vsel %vm396_vm3, %v398_v59, %v394_v48  ;;  %v402_v3 = vmul.f32 %v574_v41, %v981_v5  ;;  %vm377_vm4 = vweird.f32 %v572_v20  ;;  %577 = vrcp.f32 %v1012_v60 }
 0x131   :  { %486 = vst.msk [vmem:[#allocation5 + $0x48] sm:$0xff] %vm76_vm1, %v470_v61  ;;  %v472_v4 = vmul.f32 %v817_v54, %v399_v63  ;;  %v374_v8 = vmul.f32 %v572_v20, %v373_v49  ;;  %vm376_vm5 = vweird.f32 %v965_v15  ;;  %v412_v7 = vand.u32 2147483648, %v981_v5 }
 0x132   :  { %v576_v58 = vpop.eup %575  ;;  %v403_v57 = vsub.f32 1.0, %v402_v3  ;;  %vm381_vm6 = vcmp.eq.f32.partialorder %v380_v47, 8.507059e+37  ;;  %579 = vrcp.f32 %v1019_v51  ;;  %vm378_vm7 = vmor %vm376_vm5, %vm377_vm4  ;;  %v383_v54 = vor.u32 1.1754944e-38, %v382_v2 }
 0x133   :  { %488 = vst.msk [vmem:[#allocation5 + $0x58] sm:$0xff] %vm76_vm1, %v472_v4  ;;  %v375_v10 = vadd.f32 %v572_v20, %v374_v8  ;;  %v432_v12 = vmul.f32 %v576_v58, %v994_v36  ;;  %vm407_vm8 = vweird.f32 %v574_v41  ;;  %v410_v13 = vand.u32 2147483647, %v981_v5 }
 0x134   :  { %v404_v11 = vmul.f32 %v574_v41, %v403_v57  ;;  %vm406_vm9 = vweird.f32 %v981_v5  ;;  %vm436_vm10 = vweird.f32 %v994_v36  ;;  %v413_v50 = vor.u32 1.1754944e-38, %v412_v7 }
 0x135   :  { %v379_v14 = vsel %vm378_vm7, %v572_v20, %v375_v10  ;;  %v433_v15 = vsub.f32 1.0, %v432_v12  ;;  %v442_v9 = vand.u32 2147483648, %v994_v36  ;;  %vm408_vm11 = vmor %vm406_vm9, %vm407_vm8  ;;  %vm437_vm12 = vweird.f32 %v576_v58 }
 0x136   :  { %v384_v16 = vsel %vm381_vm6, %v383_v54, %v379_v14  ;;  %v405_v18 = vadd.f32 %v574_v41, %v404_v11  ;;  %v578_v34 = vpop.eup %577  ;;  %v440_v24 = vand.u32 2147483647, %v994_v36  ;;  %vm411_vm13 = vcmp.eq.f32.partialorder %v410_v13, 8.507059e+37  ;;  %vm438_vm14 = vmor %vm436_vm10, %vm437_vm12 }
 0x137   :  { %v471_v21 = vmul.f32 %v828_v62, %v384_v16  ;;  %v434_v22 = vmul.f32 %v576_v58, %v433_v15  ;;  %v417_v17 = vmul.f32 %v578_v34, %v1012_v60  ;;  %v443_v62 = vor.u32 1.1754944e-38, %v442_v9 }
 0x138   :  { %v409_v25 = vsel %vm408_vm11, %v574_v41, %v405_v18  ;;  %v580_v5 = vpop.eup %579  ;;  %vm441_vm15 = vcmp.eq.f32.partialorder %v440_v24, 8.507059e+37  ;;  %v425_v32 = vand.u32 2147483647, %v1012_v60  ;;  %v427_v33 = vand.u32 2147483648, %v1012_v60 }
 0x139   :  { %487 = vst.msk [vmem:[#allocation5 + $0x50] sm:$0xff] %vm76_vm1, %v471_v21  ;;  %v414_v27 = vsel %vm411_vm13, %v413_v50, %v409_v25  ;;  %v435_v42 = vadd.f32 %v576_v58, %v434_v22  ;;  %v418_v28 = vsub.f32 1.0, %v417_v17  ;;  %v447_v29 = vmul.f32 %v580_v5, %v1019_v51 }
 0x13a   :  { %v473_v19 = vmul.f32 %v833_v1, %v414_v27  ;;  %vm422_vm0 = vweird.f32 %v578_v34  ;;  %vm421_vm2 = vweird.f32 %v1012_v60  ;;  %v457_v36 = vand.u32 2147483648, %v1019_v51 }
 0x13b   :  { %v439_v30 = vsel %vm438_vm14, %v576_v58, %v435_v42  ;;  %v419_v37 = vmul.f32 %v578_v34, %v418_v28  ;;  %v448_v38 = vsub.f32 1.0, %v447_v29  ;;  %vm452_vm3 = vweird.f32 %v580_v5  ;;  %vm423_vm4 = vmor %vm421_vm2, %vm422_vm0 }
 0x13c   :  { %489 = vst.msk [vmem:[#allocation5 + $0x60] sm:$0xff] %vm76_vm1, %v473_v19  ;;  %v444_v35 = vsel %vm441_vm15, %v443_v62, %v439_v30  ;;  %v455_v39 = vand.u32 2147483647, %v1019_v51  ;;  %v428_v45 = vor.u32 1.1754944e-38, %v427_v33  ;;  %vm426_vm5 = vcmp.eq.f32.partialorder %v425_v32, 8.507059e+37 }
 0x13d   :  { %v475_v1 = vmul.f32 %v831_v0, %v444_v35  ;;  %v420_v43 = vadd.f32 %v578_v34, %v419_v37  ;;  %v449_v44 = vmul.f32 %v580_v5, %v448_v38  ;;  %vm451_vm6 = vweird.f32 %v1019_v51 }
 0x13e   :  { %vm453_vm7 = vmor %vm451_vm6, %vm452_vm3  ;;  %v458_v0 = vor.u32 1.1754944e-38, %v457_v36  ;;  %vm456_vm8 = vcmp.eq.f32.partialorder %v455_v39, 8.507059e+37 }
 0x13f   :  { %491 = vst.msk [vmem:[#allocation5 + $0x70] sm:$0xff] %vm76_vm1, %v475_v1  ;;  %v424_v23 = vsel %vm423_vm4, %v578_v34, %v420_v43  ;;  %v450_v20 = vadd.f32 %v580_v5, %v449_v44 }
 0x140   :  { %v429_v26 = vsel %vm426_vm5, %v428_v45, %v424_v23 }
 0x141   :  { %v474_v31 = vmul.f32 %v841_v55, %v429_v26  ;;  %v454_v46 = vsel %vm453_vm7, %v580_v5, %v450_v20 }
 0x142   :  { %v459_v40 = vsel %vm456_vm8, %v458_v0, %v454_v46 }
 0x143   :  { %490 = vst.msk [vmem:[#allocation5 + $0x68] sm:$0xff] %vm76_vm1, %v474_v31  ;;  %v476_v52 = vmul.f32 %v843_v6, %v459_v40 }
 0x145   :  { %492 = vst.msk [vmem:[#allocation5 + $0x78] sm:$0xff] %vm76_vm1, %v476_v52 }
 0x146   :  { %505 = dma.vmem_to_hbm [thread:$0]  %s498_s19, 2048, %s500_s22, [#allocation4], %s634_s14, %s634_s14, %s635_s15  }
 0x147   :  { %631 = dma.done.wait [#allocation4], 2048  }
 0x148   :  { %632 = vsyncadd [#allocation4], 4294965248 }
 0x149   :  { %510 = vsyncpa [#allocation3], 1 }
 0x14a   :  { %511 = vsyncpa [#allocation4], 1 }

</bundles_post_ra>
